<compile_context>
chip_gen: v5e
topology: v5e:2x2
jax: 0.10.0
libtpu: 0.0.40
codegen_flags: <defaults>
</compile_context>

<pallas_src>
import functools

import jax
import jax.numpy as jnp
import numpy as np
from jax import lax
from jax.experimental import pallas as pl
from jax.experimental.pallas import tpu as pltpu

EPS = 1e-5

# x @ W.T with W in native PyTorch (out_dim, in_dim) layout; same contraction form as the
# official TPU flash-attention kernel's q @ k.T (no vxpose on the MXU path).
TRANS_B_DIMS = (((1,), (1,)), ((), ()))


def _lan_kernel(x_ref, w_ref, g_ref, bb_ref, o_ref, *maybe_acc, tk, x_resident, inv_n):
    """One (j, k) grid step: accumulate x_tile @ w_tile.T; fused BN+ReLU epilogue at last k."""
    # Direct-accumulation path: the output tile is grid-resident across the k axis, so for
    # f32 outputs we accumulate straight into it (no scratch).  Otherwise use f32 scratch.
    acc_ref = maybe_acc[0] if maybe_acc else o_ref

    k = pl.program_id(1)
    nk = pl.num_programs(1)

    if x_resident:
        # x_ref holds the full (n, in_dim) activation matrix; slice the K tile in VMEM.
        x_tile = x_ref[:, pl.ds(pl.multiple_of(k * tk, tk), tk)]
    else:
        x_tile = x_ref[...]

    # Weight tile is (tn, tk) in PyTorch (out_dim, in_dim) layout; contract both last axes.
    partial = lax.dot_general(
        x_tile,
        w_ref[...],
        dimension_numbers=TRANS_B_DIMS,
        preferred_element_type=jnp.float32,
    )

    @pl.when(k == 0)
    def _():
        acc_ref[...] = partial.astype(acc_ref.dtype)

    @pl.when(k > 0)
    def _():
        acc_ref[...] += partial.astype(acc_ref.dtype)

    @pl.when(k == nk - 1)
    def _():
        # NOTE: the Linear bias is intentionally omitted — a per-feature constant added
        # before training-mode BatchNorm cancels exactly in (z - mean).
        z = acc_ref[...].astype(jnp.float32)                      # (n, tn)
        # Single-pass BN stats: var = E[z^2] - mean^2 (biased, as in PyTorch training mode).
        s1 = jnp.sum(z, axis=0, keepdims=True)
        s2 = jnp.sum(z * z, axis=0, keepdims=True)
        mean = s1 * inv_n
        var = jnp.maximum(s2 * inv_n - mean * mean, 0.0)
        scale = g_ref[...] * lax.rsqrt(var + EPS)                 # (1, tn)
        shift = bb_ref[...] - mean * scale                        # (1, tn)
        # Affine BN + ReLU, f32 epilogue.
        o_ref[...] = jnp.maximum(z * scale + shift, 0.0).astype(o_ref.dtype)


def _vmem_capacity_bytes():
    try:
        cap = getattr(pltpu.get_tpu_info(), "vmem_capacity_bytes", None)
        if cap:
            return int(cap)
    except Exception:
        pass
    return 64 * 2 ** 20  # conservative default (v7x has the smallest physical VMEM)


def _tile_candidates(dim, target):
    """Divisors of `dim` that are multiples of 128 and <= min(target, dim), descending.
    Falls back to the full extent (always a legal block) if no such divisor exists."""
    cands = []
    t = (min(target, dim) // 128) * 128
    while t >= 128:
        if dim % t == 0:
            cands.append(t)
        t -= 128
    return cands or [dim]


@functools.partial(jax.jit, static_argnames=("tn_target", "tk_target"))
def lan_forward(x, weight, bias, gamma, beta, *, tn_target=512, tk_target=512):
    """x: (n, in_dim); weight: (out_dim, in_dim) — native PyTorch Linear layout (NOT transposed).

    `bias` is accepted for API parity with nn.Linear but is mathematically dead under
    training-mode BatchNorm (it cancels in z - mean), so it is not fed to the kernel.
    """
    del bias
    n, in_dim = x.shape
    out_dim, in_dim_w = weight.shape
    assert in_dim_w == in_dim

    out_dtype = x.dtype
    out_itemsize = jnp.dtype(out_dtype).itemsize
    x_itemsize = x.dtype.itemsize
    w_itemsize = weight.dtype.itemsize
    x_bytes = n * in_dim * x_itemsize

    vmem_cap = _vmem_capacity_bytes()
    budget = int(0.70 * vmem_cap)          # leave headroom for compiler-internal scratch

    direct_acc = out_dtype == jnp.float32

    def footprint(tn, tk, x_res):
        x_v = 2 * x_bytes if x_res else 2 * n * tk * x_itemsize    # (double-buffered)
        return (
            x_v
            + 2 * tn * tk * w_itemsize                             # weight tiles
            + 2 * n * tn * out_itemsize                            # output tiles
            + (0 if direct_acc else n * tn * 4)                    # f32 scratch accumulator
            + 8 * tn * 4                                           # gamma / beta tiles
        )

    tn_cands = _tile_candidates(out_dim, tn_target)
    tk_cands = _tile_candidates(in_dim, tk_target)

    # Prefer keeping the whole activation matrix VMEM-resident (removes out_dim/tn - 1
    # redundant HBM reads of x), with the largest tiles that fit the per-generation budget.
    chosen = None
    for x_res in (True, False):
        for tn_c in tn_cands:
            for tk_c in tk_cands:
                if footprint(tn_c, tk_c, x_res) <= budget:
                    chosen = (tn_c, tk_c, x_res)
                    break
            if chosen:
                break
        if chosen:
            break
    if chosen is None:
        # TODO(synk): for very large n the batch axis itself should be tiled with cross-tile
        # sum/sumsq BN accumulation; fall back to the smallest tiles here.
        chosen = (tn_cands[-1], tk_cands[-1], False)
    tn, tk, x_resident = chosen

    # Give the 'parallel' j axis >= 2 tiles when out_dim allows it, so both v7x TensorCores
    # get work (x is shared/resident, weight tiles are disjoint).
    if out_dim // tn == 1:
        smaller = [t for t in tn_cands if t < out_dim]
        if smaller:
            tn = smaller[0]

    grid = (out_dim // tn, in_dim // tk)

    if x_resident:
        x_spec = pl.BlockSpec((n, in_dim), lambda j, k: (0, 0))
    else:
        x_spec = pl.BlockSpec((n, tk), lambda j, k: (0, k))

    scratch_shapes = [] if direct_acc else [pltpu.VMEM((n, tn), jnp.float32)]

    g2 = gamma.reshape(1, out_dim).astype(jnp.float32)
    be2 = beta.reshape(1, out_dim).astype(jnp.float32)

    need = footprint(tn, tk, x_resident)
    vmem_limit = int(min(int(0.85 * vmem_cap), max(2 * need, 32 * 2 ** 20)))

    kernel = functools.partial(_lan_kernel, tk=tk, x_resident=x_resident, inv_n=1.0 / n)

    cost = pl.CostEstimate(
        flops=2 * n * out_dim * in_dim + 8 * n * out_dim,
        transcendentals=out_dim,
        bytes_accessed=(
            x_bytes
            + out_dim * in_dim * w_itemsize
            + n * out_dim * out_itemsize
            + 2 * out_dim * 4
        ),
    )

    return pl.pallas_call(
        kernel,
        out_shape=jax.ShapeDtypeStruct((n, out_dim), out_dtype),
        grid_spec=pltpu.PrefetchScalarGridSpec(
            num_scalar_prefetch=0,
            grid=grid,
            in_specs=[
                x_spec,                                          # x (resident or per-K stream)
                pl.BlockSpec((tn, tk), lambda j, k: (j, k)),     # weight (out_dim, in_dim)
                pl.BlockSpec((1, tn), lambda j, k: (0, j)),      # gamma (BN weight)
                pl.BlockSpec((1, tn), lambda j, k: (0, j)),      # beta  (BN bias)
            ],
            out_specs=pl.BlockSpec((n, tn), lambda j, k: (0, j)),
            scratch_shapes=scratch_shapes,
        ),
        compiler_params=pltpu.CompilerParams(
            dimension_semantics=("parallel", "arbitrary"),
            vmem_limit_bytes=vmem_limit,
        ),
        cost_estimate=cost,
    )(x, weight, g2, be2)


def lan_reference(x, weight, bias, gamma, beta):
    z = x @ weight.T + bias
    mean = jnp.mean(z, axis=0, keepdims=True)
    var = jnp.mean((z - mean) ** 2, axis=0, keepdims=True)
    zn = (z - mean) / jnp.sqrt(var + EPS)
    zn = zn * gamma + beta
    return jnp.maximum(zn, 0.0)


if __name__ == "__main__":
    # Small shapes consistent with the module (x: [batch, in_dim]).
    batch, in_dim, out_dim = 8, 256, 128

    key = jax.random.PRNGKey(0)
    kx, kw, kb = jax.random.split(key, 3)

    x = jax.random.normal(kx, (batch, in_dim), dtype=jnp.float32)

    # Deterministic parameter init (mimics PyTorch Linear's uniform(-1/sqrt(in), 1/sqrt(in))).
    bound = 1.0 / np.sqrt(in_dim)
    weight = jax.random.uniform(
        kw, (out_dim, in_dim), minval=-bound, maxval=bound, dtype=jnp.float32
    )
    bias = jax.random.uniform(
        kb, (out_dim,), minval=-bound, maxval=bound, dtype=jnp.float32
    )
    gamma = jnp.ones((out_dim,), dtype=jnp.float32)   # BatchNorm1d weight
    beta = jnp.zeros((out_dim,), dtype=jnp.float32)   # BatchNorm1d bias

    out = lan_forward(x, weight, bias, gamma, beta)
    out = jax.block_until_ready(out)

    ref = lan_reference(x, weight, bias, gamma, beta)
    np.testing.assert_allclose(np.asarray(out), np.asarray(ref), atol=2e-5, rtol=2e-5)

    print("KERNEL_OK")
</pallas_src>

<mosaic_0001>
module attributes {stable_mosaic.version = 11 : i64} {
  func.func @_lan_kernel(%arg0: i32, %arg1: i32, %arg2: memref<8x256xf32, #tpu.memory_space<vmem>>, %arg3: memref<128x256xf32, #tpu.memory_space<vmem>>, %arg4: memref<1x128xf32, #tpu.memory_space<vmem>>, %arg5: memref<1x128xf32, #tpu.memory_space<vmem>>, %arg6: memref<8x128xf32, #tpu.memory_space<vmem>>) attributes {dimension_semantics = [#tpu.dimension_semantics<parallel>, #tpu.dimension_semantics<arbitrary>], iteration_bounds = array<i64: 1, 1>, scalar_prefetch = 0 : i64, scratch_operands = 0 : i64, tpu.core_type = #tpu.core_type<tc>, window_params = [{pipeline_mode = #tpu.pipeline_mode<synchronous>, transform_indices = @transform_0, window_bounds = array<i64: 8, 256>}, {transform_indices = @transform_1, window_bounds = array<i64: 128, 256>}, {transform_indices = @transform_2, window_bounds = array<i64: 1, 128>}, {transform_indices = @transform_3, window_bounds = array<i64: 1, 128>}, {transform_indices = @transform_4, window_bounds = array<i64: 8, 128>}]} {
    %c256_i32 = arith.constant 256 : i32
    %0 = arith.muli %arg1, %c256_i32 : i32
    %1 = tpu.assume_multiple %0, 256 : i32
    %c0 = arith.constant 0 : index
    %2 = arith.index_cast %1 : i32 to index
    %3 = vector.load %arg2[%c0, %2] : memref<8x256xf32, #tpu.memory_space<vmem>>, vector<8x256xf32>
    %c0_0 = arith.constant 0 : index
    %c0_1 = arith.constant 0 : index
    %4 = vector.load %arg3[%c0_0, %c0_1] : memref<128x256xf32, #tpu.memory_space<vmem>>, vector<128x256xf32>
    %cst = arith.constant dense<0.000000e+00> : vector<8x128xf32>
    %5 = tpu.matmul %3, %4, %cst {dimension_numbers = #tpu.dot_dimension_numbers<[1], [1], [0], [0], [0, 0, 1, 0], [], []>} : vector<8x256xf32>, vector<128x256xf32>, vector<8x128xf32> -> vector<8x128xf32>
    %c0_i32 = arith.constant 0 : i32
    %6 = arith.cmpi eq, %arg1, %c0_i32 : i32
    %7 = arith.extui %6 : i1 to i32
    %c0_i32_2 = arith.constant 0 : i32
    %8 = arith.cmpi ne, %7, %c0_i32_2 : i32
    scf.if %8 {
      %c0_7 = arith.constant 0 : index
      %c0_8 = arith.constant 0 : index
      %15 = vector.load %arg6[%c0_7, %c0_8] : memref<8x128xf32, #tpu.memory_space<vmem>>, vector<8x128xf32>
      tpu.vector_store %arg6[%c0_7, %c0_8], %5 {strides = array<i32>} : memref<8x128xf32, #tpu.memory_space<vmem>>, vector<8x128xf32>,
    } else {
    }
    %c0_i32_3 = arith.constant 0 : i32
    %9 = arith.cmpi sgt, %arg1, %c0_i32_3 : i32
    %10 = arith.extui %9 : i1 to i32
    %c0_i32_4 = arith.constant 0 : i32
    %11 = arith.cmpi ne, %10, %c0_i32_4 : i32
    scf.if %11 {
      %c0_7 = arith.constant 0 : index
      %c0_8 = arith.constant 0 : index
      %15 = vector.load %arg6[%c0_7, %c0_8] : memref<8x128xf32, #tpu.memory_space<vmem>>, vector<8x128xf32>
      %16 = arith.addf %15, %5 : vector<8x128xf32>
      %c0_9 = arith.constant 0 : index
      %c0_10 = arith.constant 0 : index
      %17 = vector.load %arg6[%c0_9, %c0_10] : memref<8x128xf32, #tpu.memory_space<vmem>>, vector<8x128xf32>
      tpu.vector_store %arg6[%c0_9, %c0_10], %16 {strides = array<i32>} : memref<8x128xf32, #tpu.memory_space<vmem>>, vector<8x128xf32>,
    } else {
    }
    %c0_i32_5 = arith.constant 0 : i32
    %12 = arith.cmpi eq, %arg1, %c0_i32_5 : i32
    %13 = arith.extui %12 : i1 to i32
    %c0_i32_6 = arith.constant 0 : i32
    %14 = arith.cmpi ne, %13, %c0_i32_6 : i32
    scf.if %14 {
      %c0_7 = arith.constant 0 : index
      %c0_8 = arith.constant 0 : index
      %15 = vector.load %arg6[%c0_7, %c0_8] : memref<8x128xf32, #tpu.memory_space<vmem>>, vector<8x128xf32>
      %cst_9 = arith.constant dense<0.000000e+00> : vector<128xf32>
      %16 = vector.multi_reduction <add>, %15, %cst_9 [0] : vector<8x128xf32> to vector<128xf32>
      %17 = vector.shape_cast %16 : vector<128xf32> to vector<1x128xf32>
      %18 = arith.mulf %15, %15 : vector<8x128xf32>
      %cst_10 = arith.constant dense<0.000000e+00> : vector<128xf32>
      %19 = vector.multi_reduction <add>, %18, %cst_10 [0] : vector<8x128xf32> to vector<128xf32>
      %20 = vector.shape_cast %19 : vector<128xf32> to vector<1x128xf32>
      %cst_11 = arith.constant 1.250000e-01 : f32
      %21 = vector.broadcast %cst_11 : f32 to vector<1x128xf32>
      %22 = arith.mulf %17, %21 : vector<1x128xf32>
      %cst_12 = arith.constant 1.250000e-01 : f32
      %23 = vector.broadcast %cst_12 : f32 to vector<1x128xf32>
      %24 = arith.mulf %20, %23 : vector<1x128xf32>
      %25 = arith.mulf %22, %22 : vector<1x128xf32>
      %26 = arith.subf %24, %25 : vector<1x128xf32>
      %cst_13 = arith.constant 0.000000e+00 : f32
      %27 = vector.broadcast %cst_13 : f32 to vector<1x128xf32>
      %28 = arith.maximumf %26, %27 : vector<1x128xf32>
      %c0_14 = arith.constant 0 : index
      %c0_15 = arith.constant 0 : index
      %29 = vector.load %arg4[%c0_14, %c0_15] : memref<1x128xf32, #tpu.memory_space<vmem>>, vector<1x128xf32>
      %cst_16 = arith.constant 9.99999974E-6 : f32
      %30 = vector.broadcast %cst_16 : f32 to vector<1x128xf32>
      %31 = arith.addf %28, %30 : vector<1x128xf32>
      %32 = math.rsqrt %31 : vector<1x128xf32>
      %33 = arith.mulf %29, %32 : vector<1x128xf32>
      %c0_17 = arith.constant 0 : index
      %c0_18 = arith.constant 0 : index
      %34 = vector.load %arg5[%c0_17, %c0_18] : memref<1x128xf32, #tpu.memory_space<vmem>>, vector<1x128xf32>
      %35 = arith.mulf %22, %33 : vector<1x128xf32>
      %36 = arith.subf %34, %35 : vector<1x128xf32>
      %37 = vector.broadcast %33 : vector<1x128xf32> to vector<8x128xf32>
      %38 = arith.mulf %15, %37 : vector<8x128xf32>
      %39 = vector.broadcast %36 : vector<1x128xf32> to vector<8x128xf32>
      %40 = arith.addf %38, %39 : vector<8x128xf32>
      %cst_19 = arith.constant 0.000000e+00 : f32
      %41 = vector.broadcast %cst_19 : f32 to vector<8x128xf32>
      %42 = arith.maximumf %40, %41 : vector<8x128xf32>
      %c0_20 = arith.constant 0 : index
      %c0_21 = arith.constant 0 : index
      %43 = vector.load %arg6[%c0_20, %c0_21] : memref<8x128xf32, #tpu.memory_space<vmem>>, vector<8x128xf32>
      tpu.vector_store %arg6[%c0_20, %c0_21], %42 {strides = array<i32>} : memref<8x128xf32, #tpu.memory_space<vmem>>, vector<8x128xf32>,
    } else {
    }
    return
  }
  func.func @transform_0(%arg0: i32, %arg1: i32) -> (i32, i32) {
    %c0_i32 = arith.constant 0 : i32
    %c0_i32_0 = arith.constant 0 : i32
    %c0_i32_1 = arith.constant 0 : i32
    return %c0_i32, %c0_i32_0 : i32, i32
  }
  func.func @transform_1(%arg0: i32, %arg1: i32) -> (i32, i32) {
    %c0_i32 = arith.constant 0 : i32
    return %arg0, %arg1 : i32, i32
  }
  func.func @transform_2(%arg0: i32, %arg1: i32) -> (i32, i32) {
    %c0_i32 = arith.constant 0 : i32
    %c0_i32_0 = arith.constant 0 : i32
    return %c0_i32, %arg0 : i32, i32
  }
  func.func @transform_3(%arg0: i32, %arg1: i32) -> (i32, i32) {
    %c0_i32 = arith.constant 0 : i32
    %c0_i32_0 = arith.constant 0 : i32
    return %c0_i32, %arg0 : i32, i32
  }
  func.func @transform_4(%arg0: i32, %arg1: i32) -> (i32, i32) {
    %c0_i32 = arith.constant 0 : i32
    %c0_i32_0 = arith.constant 0 : i32
    return %c0_i32, %arg0 : i32, i32
  }
}

</mosaic_0001>

<bundles_post_ra>
// kernel: lan_forward.1
= control target key start
LH: loop header
LB: loop body
LE: loop exit
PB: predicated region body
PF: predicated region fallthrough
CT: control target
= control target key end

     0   :  { %9 = vsyncpa [#allocation3], 0  ;;  %s337_s0 = inlined_call_operand.hbm [shape: f32[8,256], index: 0, kind: input, shape index: {}]   ;;  %s338_s1 = inlined_call_operand.hbm [shape: f32[128,256], index: 1, kind: input, shape index: {}]   ;;  %s339_s2 = inlined_call_operand.vmem [shape: f32[1,128], index: 2, kind: input, shape index: {}]   ;;  %s340_s3 = inlined_call_operand.vmem [shape: f32[1,128], index: 3, kind: input, shape index: {}]   ;;  %s341_s4 = inlined_call_operand.hbm [shape: f32[8,128], index: 4, kind: output, shape index: {}]  }
   0x1   :  { %10 = vsyncpa [#allocation6], 0 }
   0x2   :  { %11 = vsyncpa [#allocation4], 0  ;;  %s17_s17 = sshll.u32 %s337_s0, 4  ;;  %s292_s18 = smov [#allocation2]   ;;  %s18_s17 = int_to_ptr.hbm [resolvable:$true] %s17_s17 }
   0x3   :  { %s19_s19 = sshll.u32 %s292_s18, 4  ;;  %s27_s22 = sshll.u32 %s338_s1, 4  ;;  %s20_s19 = int_to_ptr.vmem [resolvable:$true] %s19_s19  ;;  %s28_s22 = int_to_ptr.hbm [resolvable:$true] %s27_s22 }
   0x4   :  { %22 = dma.hbm_to_vmem [thread:$0]  %s18_s17, 256, %s20_s19, [#allocation3]  }
   0x5   :  { %s293_s23 = smov [#allocation5]   ;;  %s294_s25 = smov 256  }
   0x6   :  { %s29_s24 = sshll.u32 %s293_s23, 4  ;;  %s295_s26 = smov 16   ;;  %s30_s24 = int_to_ptr.vmem [resolvable:$true] %s29_s24 }
   0x7   :  { %35 = dma.hbm_to_vmem [thread:$0]  %s28_s22, 4096, %s30_s24, [#allocation6], %s294_s25, %s294_s25, %s295_s26  }
   0x8   :  { %286 = dma.done.wait [#allocation3], 256  }
   0x9   :  { %287 = vsyncadd [#allocation3], 4294967040 }
   0xa   :  { %288 = dma.done.wait [#allocation6], 4096  }
   0xb   :  { %289 = vsyncadd [#allocation6], 4294963200  ;;  %v85_v0 = vld [vmem:[#allocation5 + $0xf0] sm:$0xff]  ;;  %v86_v1 = vld [vmem:[#allocation5 + $0xf8] sm:$0xff]  ;;  %s296_s29 = smov [#allocation7]  }
   0xc   :  { %87 = vmatpush.xpose.msra.mxu0 %v85_v0  ;;  %107 = vmatpush.xpose.msra.mxu1 %v86_v1  ;;  %v83_v2 = vld [vmem:[#allocation5 + $0xe0] sm:$0xff]  ;;  %v84_v3 = vld [vmem:[#allocation5 + $0xe8] sm:$0xff]  ;;  %v81_v4 = vld [vmem:[#allocation5 + $0xd0] sm:$0xff]  ;;  %s192_s30 = sshll.u32 %s296_s29, 4  ;;  %s193_s30 = int_to_ptr.vmem [resolvable:$true] %s192_s30 }
   0xd   :  { %v82_v5 = vld [vmem:[#allocation5 + $0xd8] sm:$0xff]  ;;  %v79_v6 = vld [vmem:[#allocation5 + $0xc0] sm:$0xff]  ;;  %v80_v7 = vld [vmem:[#allocation5 + $0xc8] sm:$0xff] }
   0xe   :  { %v77_v8 = vld [vmem:[#allocation5 + $0xb0] sm:$0xff]  ;;  %v78_v9 = vld [vmem:[#allocation5 + $0xb8] sm:$0xff]  ;;  %v75_v10 = vld [vmem:[#allocation5 + $0xa0] sm:$0xff] }
   0xf   :  { %v76_v11 = vld [vmem:[#allocation5 + $0xa8] sm:$0xff]  ;;  %v73_v12 = vld [vmem:[#allocation5 + $0x90] sm:$0xff]  ;;  %v74_v13 = vld [vmem:[#allocation5 + $0x98] sm:$0xff] }
  0x10   :  { %88 = vmatpush.xpose.msra.mxu0 %v83_v2  ;;  %108 = vmatpush.xpose.msra.mxu1 %v84_v3  ;;  %v71_v14 = vld [vmem:[#allocation5 + $0x80] sm:$0xff]  ;;  %v72_v15 = vld [vmem:[#allocation5 + $0x88] sm:$0xff]  ;;  %v69_v16 = vld [vmem:[#allocation5 + $0x70] sm:$0xff] }
  0x11   :  { %v70_v17 = vld [vmem:[#allocation5 + $0x78] sm:$0xff]  ;;  %v67_v18 = vld [vmem:[#allocation5 + $0x60] sm:$0xff]  ;;  %v68_v19 = vld [vmem:[#allocation5 + $0x68] sm:$0xff] }
  0x12   :  { %v65_v20 = vld [vmem:[#allocation5 + $0x50] sm:$0xff]  ;;  %v66_v21 = vld [vmem:[#allocation5 + $0x58] sm:$0xff]  ;;  %v63_v22 = vld [vmem:[#allocation5 + $0x40] sm:$0xff] }
  0x13   :  { %v64_v23 = vld [vmem:[#allocation5 + $0x48] sm:$0xff]  ;;  %v61_v24 = vld [vmem:[#allocation5 + $0x30] sm:$0xff]  ;;  %v62_v25 = vld [vmem:[#allocation5 + $0x38] sm:$0xff] }
  0x14   :  { %89 = vmatpush.xpose.msra.mxu0 %v81_v4  ;;  %109 = vmatpush.xpose.msra.mxu1 %v82_v5  ;;  %v59_v26 = vld [vmem:[#allocation5 + $0x20] sm:$0xff]  ;;  %v60_v27 = vld [vmem:[#allocation5 + $0x28] sm:$0xff]  ;;  %v57_v28 = vld [vmem:[#allocation5 + $0x10] sm:$0xff] }
  0x15   :  { %v58_v29 = vld [vmem:[#allocation5 + $0x18] sm:$0xff]  ;;  %v55_v30 = vld [vmem:[#allocation5] sm:$0xff]  ;;  %v56_v31 = vld [vmem:[#allocation5 + $0x8] sm:$0xff] }
  0x16   :  { %v53_v32 = vld [vmem:[#allocation2] sm:$0xff]  ;;  %v54_v33 = vld [vmem:[#allocation2 + $0x8] sm:$0xff] }
  0x17   :  { %v161_v61 = vld [vmem:[%s339_s2] sm:$0x1]  ;;  %s194_s2 = sshll.u32 %s341_s4, 4  ;;  %s195_s2 = int_to_ptr.hbm [resolvable:$true] %s194_s2 }
  0x18   :  { %90 = vmatpush.xpose.msra.mxu0 %v79_v6  ;;  %110 = vmatpush.xpose.msra.mxu1 %v80_v7  ;;  %v174_v1 = vld [vmem:[%s340_s3] sm:$0x1] }
  0x1c   :  { %91 = vmatpush.xpose.msra.mxu0 %v77_v8  ;;  %111 = vmatpush.xpose.msra.mxu1 %v78_v9 }
  0x20   :  { %92 = vmatpush.xpose.msra.mxu0 %v75_v10  ;;  %112 = vmatpush.xpose.msra.mxu1 %v76_v11 }
  0x24   :  { %93 = vmatpush.xpose.msra.mxu0 %v73_v12  ;;  %113 = vmatpush.xpose.msra.mxu1 %v74_v13 }
  0x28   :  { %94 = vmatpush.xpose.msra.mxu0 %v71_v14  ;;  %114 = vmatpush.xpose.msra.mxu1 %v72_v15 }
  0x2c   :  { %95 = vmatpush.xpose.msra.mxu0 %v69_v16  ;;  %115 = vmatpush.xpose.msra.mxu1 %v70_v17 }
  0x30   :  { %96 = vmatpush.xpose.msra.mxu0 %v67_v18  ;;  %116 = vmatpush.xpose.msra.mxu1 %v68_v19 }
  0x34   :  { %97 = vmatpush.xpose.msra.mxu0 %v65_v20  ;;  %117 = vmatpush.xpose.msra.mxu1 %v66_v21 }
  0x38   :  { %98 = vmatpush.xpose.msra.mxu0 %v63_v22  ;;  %118 = vmatpush.xpose.msra.mxu1 %v64_v23 }
  0x3c   :  { %99 = vmatpush.xpose.msra.mxu0 %v61_v24  ;;  %119 = vmatpush.xpose.msra.mxu1 %v62_v25 }
  0x40   :  { %100 = vmatpush.xpose.msra.mxu0 %v59_v26  ;;  %120 = vmatpush.xpose.msra.mxu1 %v60_v27 }
  0x44   :  { %101 = vmatpush.xpose.msra.mxu0 %v57_v28  ;;  %121 = vmatpush.xpose.msra.mxu1 %v58_v29 }
  0x48   :  { %102 = vmatpush.xpose.msra.mxu0 %v55_v30  ;;  %122 = vmatpush.xpose.msra.mxu1 %v56_v31 }
  0x4b   :  { %103 = vmatmul.f32.vlgmr.msra.gmra.mxu0 %v53_v32  ;;  %123 = vmatmul.f32.vlgmr.msra.gmra.mxu1 %v54_v33 }
  0xc8   :  { %v104_v34 = vpop.f32.mrf.mxu0  ;;  %v124_v35 = vpop.f32.mrf.mxu1 }
  0xc9   :  { %v125_v36 = vadd.f32 %v124_v35, %v104_v34 }
  0xcb   :  { %v143_v37 = vrot.slane %v125_v36, 4  ;;  %v149_v38 = vmul.f32 %v125_v36, %v125_v36 }
  0xcd   :  { %v144_v39 = vadd.f32 %v143_v37, %v125_v36  ;;  %v150_v40 = vrot.slane %v149_v38, 4 }
  0xcf   :  { %v145_v41 = vrot.slane %v144_v39, 2  ;;  %v151_v42 = vadd.f32 %v150_v40, %v149_v38 }
  0xd1   :  { %v146_v43 = vadd.f32 %v145_v41, %v144_v39  ;;  %v152_v44 = vrot.slane %v151_v42, 2 }
  0xd3   :  { %v147_v45 = vrot.slane %v146_v43, 1  ;;  %v153_v46 = vadd.f32 %v152_v44, %v151_v42 }
  0xd5   :  { %v148_v47 = vadd.f32 %v147_v45, %v146_v43  ;;  %v154_v48 = vrot.slane %v153_v46, 1 }
  0xd7   :  { %v155_v49 = vadd.f32 %v154_v48, %v153_v46  ;;  %v156_v50 = vmul.f32 0.125, %v148_v47 }
  0xd9   :  { %v157_v51 = vmul.f32 0.125, %v155_v49  ;;  %v158_v52 = vmul.f32 %v156_v50, %v156_v50 }
  0xdb   :  { %v159_v53 = vsub.f32 %v157_v51, %v158_v52 }
  0xdd   :  { %v160_v54 = vmax.f32 %v159_v53, 0.0 }
  0xdf   :  { %v162_v55 = vadd.f32 1e-05, %v160_v54 }
  0xe1   :  { %212 = vrsqrt.f32 %v162_v55  ;;  %vm169_vm1 = vweird.f32 %v162_v55 }
  0xe7   :  { %v213_v56 = vpop.eup %212 }
  0xe8   :  { %v164_v57 = vmul.f32 %v213_v56, %v162_v55  ;;  %vm170_vm0 = vweird.f32 %v213_v56 }
  0xe9   :  { %vm171_vm2 = vmor %vm169_vm1, %vm170_vm0 }
  0xea   :  { %v165_v58 = vmul.f32 %v213_v56, %v164_v57 }
  0xec   :  { %v166_v59 = vmul.f32 0.5, %v165_v58 }
  0xee   :  { %v167_v60 = vsub.f32 1.5, %v166_v59 }
  0xf0   :  { %v168_v62 = vmul.f32 %v213_v56, %v167_v60 }
  0xf2   :  { %v172_v63 = vsel %vm171_vm2, %v213_v56, %v168_v62 }
  0xf3   :  { %v173_v0 = vmul.f32 %v172_v63, %v161_v61 }
  0xf5   :  { %v175_v2 = vmul.f32 %v173_v0, %v156_v50  ;;  %v178_v3 = vperm.slane %v173_v0, 0 }
  0xf7   :  { %v176_v4 = vsub.f32 %v174_v1, %v175_v2  ;;  %v180_v5 = vmul.f32 %v178_v3, %v125_v36 }
  0xf9   :  { %v182_v6 = vperm.slane %v176_v4, 0 }
  0xfb   :  { %v184_v7 = vadd.f32 %v182_v6, %v180_v5 }
  0xfd   :  { %v185_v8 = vmax.f32 %v184_v7, 0.0 }
  0xff   :  { %186 = vst [vmem:[#allocation7] sm:$0xff] %v185_v8 }
 0x100   :  { %197 = dma.vmem_to_hbm [thread:$0]  %s193_s30, 128, %s195_s2, [#allocation4]  }
 0x101   :  { %290 = dma.done.wait [#allocation4], 128  }
 0x102   :  { %291 = vsyncadd [#allocation4], 4294967168 }
 0x103   :  { %202 = vsyncpa [#allocation3], 1 }
 0x104   :  { %203 = vsyncpa [#allocation6], 1 }
 0x105   :  { %204 = vsyncpa [#allocation4], 1 }

</bundles_post_ra>
